<compile_context>
chip_gen: v6e
topology: v6e:2x2x1
jax: 0.10.0
libtpu: 0.0.40
codegen_flags: <defaults>
</compile_context>

<pallas_src>
import jax
import jax.numpy as jnp
from jax.experimental import pallas as pl
from jax.experimental.pallas import tpu as pltpu


def _time_encoder_kernel(te_ref, fq_ref, mask_ref, wt_ref, b_ref, out_ref):
    # te_ref:   (Bb, T, D)  bf16   time_encoder block
    # fq_ref:   (Bb, T, D)  bf16   final_queries block
    # mask_ref: (Bb, T)     int32  (nonzero -> masked)
    # wt_ref:   (D, D)      bf16   W^T (so x @ wt == nn.Linear's x @ W^T)
    # b_ref:    (1, D)      f32    bias
    # out_ref:  (Bb, T)     f32    per-batch softmax over T (lane-dense)
    bb, t, d = te_ref.shape

    # Linear + ReLU: one (Bb*T, D) x (D, D) MXU matmul, f32 accumulation.
    te = te_ref[...].reshape(bb * t, d)
    h = jnp.dot(te, wt_ref[...], preferred_element_type=jnp.float32)
    h = h.reshape(bb, t, d) + b_ref[...]
    h = jnp.maximum(h, 0.0)

    # <h, final_queries> over the feature (lane) dim -> lane-dense (Bb, T).
    s = jnp.sum(h * fq_ref[...].astype(jnp.float32), axis=-1)

    # masked_fill_(mask, -1e8)
    s = jnp.where(mask_ref[...] != 0, jnp.float32(-100000000.0), s)

    # softmax over the time axis (last dim = lanes)
    s_max = jnp.max(s, axis=-1, keepdims=True)
    e = jnp.exp(s - s_max)
    out_ref[...] = e / jnp.sum(e, axis=-1, keepdims=True)


def _choose_block_b(B, T, D, vmem_budget_bytes=24 * 1024 * 1024):
    """Pick a batch block so the flattened matmul has >=~512 rows, the
    double-buffered streamed inputs stay under a conservative VMEM budget
    (safe on v7x's 32 MiB scoped default), and (Bb, T) blocks tile (B, T)
    cleanly (Bb == B or Bb a multiple of 8 dividing B)."""
    target_rows = 512
    bb = max(1, target_rows // max(T, 1))
    per_batch_bytes = 2 * 2 * T * D * 2          # 2 inputs x 2 buffers x bf16
    while bb > 1 and bb * per_batch_bytes > vmem_budget_bytes:
        bb //= 2
    if bb >= B:
        return B
    bb = max(8, (bb // 8) * 8)
    while bb > 8 and B % bb != 0:
        bb -= 8
    if bb >= B or B % bb != 0:
        return B
    return bb


def time_encoder_forward(time_encoder, final_queries, mask, weight, bias,
                         *, block_b=None):
    """time_encoder, final_queries: (B, T, D); mask: (B, T, 1) or (B, T) bool;
    weight: (D, D) PyTorch Linear weight (y = x @ W^T + b); bias: (D,).
    Returns softmax scores of shape (B, T, 1)."""
    B, T, D = time_encoder.shape
    if block_b is None:
        block_b = _choose_block_b(B, T, D)
    grid_b = pl.cdiv(B, block_b)

    # bf16 streaming of the big inputs; weight pre-transposed for nn.Linear.
    te = time_encoder.astype(jnp.bfloat16)
    fq = final_queries.astype(jnp.bfloat16)
    wt = weight.T.astype(jnp.bfloat16)                     # (D, D)
    b2 = bias.reshape(1, D).astype(jnp.float32)            # (1, D)
    mask2d = mask.reshape(B, T).astype(jnp.int32)          # lane-dense mask

    out2d = pl.pallas_call(
        _time_encoder_kernel,
        out_shape=jax.ShapeDtypeStruct((B, T), jnp.float32),
        grid_spec=pl.GridSpec(
            grid=(grid_b,),
            in_specs=[
                pl.BlockSpec((block_b, T, D), lambda b: (b, 0, 0)),  # te
                pl.BlockSpec((block_b, T, D), lambda b: (b, 0, 0)),  # fq
                pl.BlockSpec((block_b, T), lambda b: (b, 0)),        # mask
                pl.BlockSpec((D, D), lambda b: (0, 0)),              # W^T (resident)
                pl.BlockSpec((1, D), lambda b: (0, 0)),              # bias (resident)
            ],
            out_specs=pl.BlockSpec((block_b, T), lambda b: (b, 0)),
        ),
        compiler_params=pltpu.CompilerParams(
            dimension_semantics=("parallel",)),
    )(te, fq, mask2d, wt, b2)

    return out2d.reshape(B, T, 1)


def _reference_bf16(time_encoder, final_queries, mask, weight, bias):
    # Same math as the PyTorch module, at the kernel's streaming precision
    # (bf16 inputs/weight, f32 accumulation) for a tight comparison.
    te = time_encoder.astype(jnp.bfloat16)
    fq = final_queries.astype(jnp.bfloat16).astype(jnp.float32)
    w = weight.astype(jnp.bfloat16)
    h = jnp.einsum("btd,ed->bte", te, w,
                   preferred_element_type=jnp.float32) + bias
    h = jax.nn.relu(h)
    s = jnp.sum(h * fq, axis=2, keepdims=True)
    s = jnp.where(mask, -100000000.0, s)
    return jax.nn.softmax(s, axis=1)


def _reference_f32(time_encoder, final_queries, mask, weight, bias):
    h = jax.nn.relu(jnp.einsum("btd,ed->bte", time_encoder, weight) + bias)
    s = jnp.sum(h * final_queries, axis=2, keepdims=True)
    s = jnp.where(mask, -100000000.0, s)
    return jax.nn.softmax(s, axis=1)


if __name__ == "__main__":
    B, T, D = 2, 8, 32   # batch, time, ninp
    key = jax.random.PRNGKey(0)
    k1, k2, k3, k4, k5 = jax.random.split(key, 5)

    time_encoder = jax.random.normal(k1, (B, T, D), dtype=jnp.float32)
    final_queries = jax.random.normal(k2, (B, T, D), dtype=jnp.float32)
    mask = jax.random.bernoulli(k3, p=0.25, shape=(B, T, 1))

    # deterministic Linear(ninp, ninp) params (synthetic, not a checkpoint)
    bound = 1.0 / (D ** 0.5)
    weight = jax.random.uniform(k4, (D, D), jnp.float32, -bound, bound)
    bias = jax.random.uniform(k5, (D,), jnp.float32, -bound, bound)

    out = time_encoder_forward(time_encoder, final_queries, mask, weight, bias)
    out = jax.block_until_ready(out)
    assert out.shape == (B, T, 1)

    # Tight check against a precision-matched (bf16-streamed) reference.
    ref_bf16 = _reference_bf16(time_encoder, final_queries, mask, weight, bias)
    assert jnp.allclose(out, ref_bf16, atol=1e-4, rtol=1e-4), \
        "mismatch vs bf16-matched reference"

    # Loose sanity check against the pure-f32 module math.
    ref_f32 = _reference_f32(time_encoder, final_queries, mask, weight, bias)
    assert jnp.allclose(out, ref_f32, atol=5e-2, rtol=5e-2), \
        "mismatch vs f32 reference"

    print("KERNEL_OK")
</pallas_src>

<mosaic_0001>
module attributes {stable_mosaic.version = 11 : i64} {
  func.func @_time_encoder_kernel(%arg0: i32, %arg1: memref<2x8x32xbf16, #tpu.memory_space<vmem>>, %arg2: memref<2x8x32xbf16, #tpu.memory_space<vmem>>, %arg3: memref<2x8xi32, #tpu.memory_space<vmem>>, %arg4: memref<32x32xbf16, #tpu.memory_space<vmem>>, %arg5: memref<1x32xf32, #tpu.memory_space<vmem>>, %arg6: memref<2x8xf32, #tpu.memory_space<vmem>>) attributes {dimension_semantics = [#tpu.dimension_semantics<parallel>], iteration_bounds = array<i64: 1>, scalar_prefetch = 0 : i64, scratch_operands = 0 : i64, tpu.core_type = #tpu.core_type<tc>, window_params = [{transform_indices = @transform_0, window_bounds = array<i64: 2, 8, 32>}, {transform_indices = @transform_1, window_bounds = array<i64: 2, 8, 32>}, {transform_indices = @transform_2, window_bounds = array<i64: 2, 8>}, {pipeline_mode = #tpu.pipeline_mode<synchronous>, transform_indices = @transform_3, window_bounds = array<i64: 32, 32>}, {pipeline_mode = #tpu.pipeline_mode<synchronous>, transform_indices = @transform_4, window_bounds = array<i64: 1, 32>}, {transform_indices = @transform_5, window_bounds = array<i64: 2, 8>}]} {
    %c0 = arith.constant 0 : index
    %c0_0 = arith.constant 0 : index
    %c0_1 = arith.constant 0 : index
    %0 = vector.load %arg1[%c0, %c0_0, %c0_1] : memref<2x8x32xbf16, #tpu.memory_space<vmem>>, vector<2x8x32xbf16>
    %1 = vector.shape_cast %0 : vector<2x8x32xbf16> to vector<16x32xbf16>
    %c0_2 = arith.constant 0 : index
    %c0_3 = arith.constant 0 : index
    %2 = vector.load %arg4[%c0_2, %c0_3] : memref<32x32xbf16, #tpu.memory_space<vmem>>, vector<32x32xbf16>
    %cst = arith.constant dense<0.000000e+00> : vector<16x32xf32>
    %3 = tpu.matmul %1, %2, %cst {dimension_numbers = #tpu.dot_dimension_numbers<[1], [0], [0], [1], [0, 0, 1, 1], [], []>} : vector<16x32xbf16>, vector<32x32xbf16>, vector<16x32xf32> -> vector<16x32xf32>
    %4 = vector.shape_cast %3 : vector<16x32xf32> to vector<2x8x32xf32>
    %c0_4 = arith.constant 0 : index
    %c0_5 = arith.constant 0 : index
    %5 = vector.load %arg5[%c0_4, %c0_5] : memref<1x32xf32, #tpu.memory_space<vmem>>, vector<1x32xf32>
    %6 = vector.shape_cast %5 : vector<1x32xf32> to vector<1x1x32xf32>
    %7 = vector.broadcast %6 : vector<1x1x32xf32> to vector<2x8x32xf32>
    %8 = arith.addf %4, %7 : vector<2x8x32xf32>
    %cst_6 = arith.constant 0.000000e+00 : f32
    %9 = vector.broadcast %cst_6 : f32 to vector<2x8x32xf32>
    %10 = arith.maximumf %8, %9 : vector<2x8x32xf32>
    %c0_7 = arith.constant 0 : index
    %c0_8 = arith.constant 0 : index
    %c0_9 = arith.constant 0 : index
    %11 = vector.load %arg2[%c0_7, %c0_8, %c0_9] : memref<2x8x32xbf16, #tpu.memory_space<vmem>>, vector<2x8x32xbf16>
    %12 = arith.extf %11 : vector<2x8x32xbf16> to vector<2x8x32xf32>
    %13 = arith.mulf %10, %12 : vector<2x8x32xf32>
    %cst_10 = arith.constant dense<0.000000e+00> : vector<2x8xf32>
    %14 = vector.multi_reduction <add>, %13, %cst_10 [2] : vector<2x8x32xf32> to vector<2x8xf32>
    %c0_11 = arith.constant 0 : index
    %c0_12 = arith.constant 0 : index
    %15 = vector.load %arg3[%c0_11, %c0_12] : memref<2x8xi32, #tpu.memory_space<vmem>>, vector<2x8xi32>
    %c0_i32 = arith.constant 0 : i32
    %16 = vector.broadcast %c0_i32 : i32 to vector<2x8xi32>
    %17 = arith.cmpi ne, %15, %16 : vector<2x8xi32>
    %cst_13 = arith.constant -1.000000e+08 : f32
    %18 = vector.broadcast %cst_13 : f32 to vector<2x8xf32>
    %19 = arith.select %17, %18, %14 : vector<2x8xi1>, vector<2x8xf32>
    %cst_14 = arith.constant dense<0xFF800000> : vector<2xf32>
    %20 = vector.multi_reduction <maximumf>, %19, %cst_14 [1] : vector<2x8xf32> to vector<2xf32>
    %21 = vector.shape_cast %20 : vector<2xf32> to vector<2x1xf32>
    %22 = vector.broadcast %21 : vector<2x1xf32> to vector<2x8xf32>
    %23 = arith.subf %19, %22 : vector<2x8xf32>
    %24 = math.exp %23 : vector<2x8xf32>
    %cst_15 = arith.constant dense<0.000000e+00> : vector<2xf32>
    %25 = vector.multi_reduction <add>, %24, %cst_15 [1] : vector<2x8xf32> to vector<2xf32>
    %26 = vector.shape_cast %25 : vector<2xf32> to vector<2x1xf32>
    %27 = vector.broadcast %26 : vector<2x1xf32> to vector<2x8xf32>
    %28 = arith.divf %24, %27 : vector<2x8xf32>
    %c0_16 = arith.constant 0 : index
    %c0_17 = arith.constant 0 : index
    %29 = vector.load %arg6[%c0_16, %c0_17] : memref<2x8xf32, #tpu.memory_space<vmem>>, vector<2x8xf32>
    tpu.vector_store %arg6[%c0_16, %c0_17], %28 {strides = array<i32>} : memref<2x8xf32, #tpu.memory_space<vmem>>, vector<2x8xf32>,
    return
  }
  func.func @transform_0(%arg0: i32) -> (i32, i32, i32) {
    %c0_i32 = arith.constant 0 : i32
    %c0_i32_0 = arith.constant 0 : i32
    %c0_i32_1 = arith.constant 0 : i32
    return %arg0, %c0_i32, %c0_i32_0 : i32, i32, i32
  }
  func.func @transform_1(%arg0: i32) -> (i32, i32, i32) {
    %c0_i32 = arith.constant 0 : i32
    %c0_i32_0 = arith.constant 0 : i32
    %c0_i32_1 = arith.constant 0 : i32
    return %arg0, %c0_i32, %c0_i32_0 : i32, i32, i32
  }
  func.func @transform_2(%arg0: i32) -> (i32, i32) {
    %c0_i32 = arith.constant 0 : i32
    %c0_i32_0 = arith.constant 0 : i32
    return %arg0, %c0_i32 : i32, i32
  }
  func.func @transform_3(%arg0: i32) -> (i32, i32) {
    %c0_i32 = arith.constant 0 : i32
    %c0_i32_0 = arith.constant 0 : i32
    %c0_i32_1 = arith.constant 0 : i32
    return %c0_i32, %c0_i32_0 : i32, i32
  }
  func.func @transform_4(%arg0: i32) -> (i32, i32) {
    %c0_i32 = arith.constant 0 : i32
    %c0_i32_0 = arith.constant 0 : i32
    %c0_i32_1 = arith.constant 0 : i32
    return %c0_i32, %c0_i32_0 : i32, i32
  }
  func.func @transform_5(%arg0: i32) -> (i32, i32) {
    %c0_i32 = arith.constant 0 : i32
    %c0_i32_0 = arith.constant 0 : i32
    return %arg0, %c0_i32 : i32, i32
  }
}

</mosaic_0001>

<bundles_post_ra>
// kernel: tpu_custom_call.1
= control target key start
LH: loop header
LB: loop body
LE: loop exit
PB: predicated region body
PF: predicated region fallthrough
CT: control target
= control target key end

     0   :  { %10 = vsyncpa [#allocation3], 0  ;;  %s384_s0 = inlined_call_operand.hbm [shape: bf16[2,8,32], index: 0, kind: input, shape index: {}]   ;;  %s385_s1 = inlined_call_operand.hbm [shape: bf16[2,8,32], index: 1, kind: input, shape index: {}]   ;;  %s386_s2 = inlined_call_operand.vmem [shape: s32[2,8], index: 2, kind: input, shape index: {}]   ;;  %s387_s3 = inlined_call_operand.hbm [shape: bf16[32,32], index: 3, kind: input, shape index: {}]   ;;  %s388_s4 = inlined_call_operand.vmem [shape: f32[1,32], index: 4, kind: input, shape index: {}]   ;;  %s389_s5 = inlined_call_operand.hbm [shape: f32[2,8], index: 5, kind: output, shape index: {}]  }
   0x1   :  { %11 = vsyncpa [#allocation6], 0 }
   0x2   :  { %12 = vsyncpa [#allocation4], 0  ;;  %s322_s18 = smov [#allocation5]   ;;  %s323_s20 = smov [#allocation2]  }
   0x3   :  { %s30_s19 = sshll.u32 %s322_s18, 4  ;;  %s18_s21 = sshll.u32 %s323_s20, 4  ;;  %s31_s19 = int_to_ptr.vmem [resolvable:$true] %s30_s19  ;;  %s19_s21 = int_to_ptr.vmem [resolvable:$true] %s18_s21 }
   0x4   :  { %s244_s22 = scalar_lea.vmem %s31_s19, 128  ;;  %p249_p1 = scmp.lt.s32.totalorder %s31_s19, %s31_s19 }
   0x5   :  { %p245_p0 = scmp.ne.s32.totalorder %s31_s19, %s244_s22  ;;  %p250_p2 = scmp.lt.s32.totalorder %s244_s22, %s244_s22 }
   0x7   :  { %p251_p3 = por %p250_p2, %p249_p1 }
   0x9   :  { %p252_p4 = pnand %p251_p3, %p245_p0 }
   0xb   :  { %255 = shalt.err (!%p252_p4)
}
   0xc   :  { %s324_s23 = smov 64   ;;  %s325_s24 = smov 4  }
   0xd   :  { %36 = dma.hbm_to_vmem [thread:$0]  %s385_s1, 128, %s31_s19, [#allocation6], %s324_s23, %s324_s23, %s325_s24  }
   0xe   :  { %s264_s27 = scalar_lea.vmem %s19_s21, 128  ;;  %p269_p6 = scmp.lt.s32.totalorder %s19_s21, %s19_s21 }
   0xf   :  { %p265_p5 = scmp.ne.s32.totalorder %s19_s21, %s264_s27  ;;  %p270_p7 = scmp.lt.s32.totalorder %s264_s27, %s264_s27 }
  0x11   :  { %p271_p8 = por %p270_p7, %p269_p6 }
  0x13   :  { %p272_p9 = pnand %p271_p8, %p265_p5 }
  0x15   :  { %275 = shalt.err (!%p272_p9)
}
  0x16   :  { %24 = dma.hbm_to_vmem [thread:$0]  %s384_s0, 128, %s19_s21, [#allocation3], %s324_s23, %s324_s23, %s325_s24  }
  0x17   :  { %s326_s30 = smov [#allocation7]  }
  0x18   :  { %s44_s6 = sshll.u32 %s326_s30, 4  ;;  %s45_s6 = int_to_ptr.vmem [resolvable:$true] %s44_s6 }
  0x19   :  { %s284_s7 = scalar_lea.vmem %s45_s6, 256  ;;  %p289_p11 = scmp.lt.s32.totalorder %s45_s6, %s45_s6 }
  0x1a   :  { %p285_p10 = scmp.ne.s32.totalorder %s45_s6, %s284_s7  ;;  %p290_p12 = scmp.lt.s32.totalorder %s284_s7, %s284_s7 }
  0x1c   :  { %p291_p13 = por %p290_p12, %p289_p11 }
  0x1e   :  { %p292_p0 = pnand %p291_p13, %p285_p10 }
  0x20   :  { %295 = shalt.err (!%p292_p0)
}
  0x21   :  { %50 = dma.hbm_to_vmem [thread:$0]  %s387_s3, 256, %s45_s6, [#allocation6], %s324_s23, %s324_s23, %s325_s24  }
  0x22   :  { %316 = dma.done.wait [#allocation3], 128  }
  0x23   :  { %317 = vsyncadd [#allocation3], 4294967168 }
  0x24   :  { %318 = dma.done.wait [#allocation6], 384  }
  0x25   :  { %319 = vsyncadd [#allocation6], 4294966912  ;;  %v327_v0 = vmov 0.0   ;;  %vm328_vm0 = vmmov 0   ;;  %v229_v1 = vld [vmem:[#allocation7 + $0x8] sm:$0xff]   ;;  %v230_v2 = vld [vmem:[#allocation7] sm:$0xff]   ;;  %v158_v20 = vlaneseq }
  0x26   :  { %213 = vmatprep.subr.bf16.mxu0 %v327_v0  ;;  %217 = vmatprep.mubr.msk.bf16.mxu0 %vm328_vm0, %v327_v0  ;;  %v231_v3 = vld [vmem:[#allocation2] sm:$0xff]   ;;  %vm86_vm1 = vcmask 261120   ;;  %v207_v5 = vld [vmem:[#allocation5] sm:$0xff]   ;;  %vm168_vm2 = vcmask 1041409   ;;  %vm172_vm4 = vcmask 58368  }
  0x27   :  { %214 = vmatpush3.bf16.msra.mxu0 %v229_v1  ;;  %v205_v4 = vld [vmem:[%s388_s4] ss:$0 sm:$0xff]  ;;  %v208_v8 = vunpack.c.l.bf16 %v207_v5  ;;  %v209_v14 = vunpack.c.h.bf16 %v207_v5  ;;  %v159_v21 = vand.u32 127, %v158_v20  ;;  %v161_v22 = vshrl.u32 %v158_v20, 7 }
  0x28   :  { %215 = vmatprep.subr.bf16.mxu0 %v327_v0  ;;  %v154_v25 = vld [vmem:[%s386_s2] sm:$0x3]  ;;  %s329_s2 = smov [#allocation8]  }
  0x29   :  { %v162_v24 = vsub.s32 %v159_v21, %v161_v22  ;;  %vm155_vm3 = vcmp.ne.s32.totalorder %v154_v25, 0  ;;  %s191_s10 = sshll.u32 %s329_s2, 4  ;;  %s192_s10 = int_to_ptr.vmem [resolvable:$true] %s191_s10 }
  0x2a   :  { %s296_s11 = scalar_lea.vmem %s192_s10, 32  ;;  %p301_p2 = scmp.lt.s32.totalorder %s192_s10, %s192_s10 }
  0x2b   :  { %216 = vmatpush3.bf16.msra.mxu0 %v230_v2  ;;  %p297_p1 = scmp.ne.s32.totalorder %s192_s10, %s296_s11  ;;  %p302_p3 = scmp.lt.s32.totalorder %s296_s11, %s296_s11 }
  0x2d   :  { %p303_p4 = por %p302_p3, %p301_p2 }
  0x2e   :  { %218 = vmatmul.mubr.msk.bf16.vlgmr.msra.gmra.mxu0 %vm86_vm1, %v231_v3 }
  0x2f   :  { %p304_p5 = pnand %p303_p4, %p297_p1 }
  0xee   :  { %v124_v6 = vpop.f32.mrf.mxu0 }
  0xef   :  { %v138_v7 = vadd.f32 %v205_v4, %v124_v6 }
  0xf0   :  { %v219_v9 = vpop.f32.mrf.mxu0 }
  0xf1   :  { %v140_v10 = vmax.f32 %v138_v7, 0.0 }
  0xf2   :  { %v127_v11 = vpop.f32.mrf.mxu0 }
  0xf3   :  { %v139_v12 = vadd.f32 %v205_v4, %v127_v11  ;;  %v146_v13 = vmul.f32 %v208_v8, %v140_v10 }
  0xf4   :  { %v220_v15 = vpop.f32.mrf.mxu0 }
  0xf5   :  { %v141_v16 = vmax.f32 %v139_v12, 0.0  ;;  %v148_v17 = vsel %vm86_vm1, %v146_v13, 0.0 }
  0xf6   :  { %149 = vadd.xlane.f32.xlu0 %v148_v17 }
  0xf7   :  { %v147_v18 = vmul.f32 %v209_v14, %v141_v16 }
  0xf9   :  { %v151_v19 = vsel %vm86_vm1, %v147_v18, 0.0 }
  0xfa   :  { %152 = vadd.xlane.f32.xlu0 %v151_v19 }
 0x17f   :  { %v150_v23 = vpop.xlane.xlu0 %149 }
 0x180   :  { %v163_v27 = vrot.slane %v150_v23, %v162_v24 }
 0x183   :  { %v153_v26 = vpop.xlane.xlu0 %152 }
 0x184   :  { %v167_v28 = vrot.slane %v153_v26, %v162_v24 }
 0x186   :  { %v169_v29 = vsel %vm168_vm2, %v167_v28, %v163_v27 }
 0x187   :  { %v171_v30 = vsel %vm155_vm3, -1e+08, %v169_v29 }
 0x188   :  { %v173_v31 = vsel %vm172_vm4, %v171_v30, -inf }
 0x189   :  { %174 = vmax.xlane.f32.xlu1 %v173_v31 }
 0x212   :  { %v175_v32 = vpop.xlane.xlu1 %174 }
 0x213   :  { %v176_v33 = vsub.f32 %v171_v30, %v175_v32 }
 0x215   :  { %v177_v34 = vmul.f32 1.442695, %v176_v33 }
 0x217   :  { %232 = vpow2.f32 %v177_v34 }
 0x224   :  { %v233_v35 = vpop.eup %232 }
 0x225   :  { %v179_v36 = vsel %vm172_vm4, %v233_v35, 0.0 }
 0x226   :  { %180 = vadd.xlane.f32.xlu1 %v179_v36 }
 0x2af   :  { %v181_v37 = vpop.xlane.xlu1 %180 }
 0x2b0   :  { %234 = vrcp.f32 %v181_v37 }
 0x2bd   :  { %v235_v38 = vpop.eup %234 }
 0x2be   :  { %v183_v39 = vmul.f32 %v235_v38, %v233_v35 }
 0x2c0   :  { %184 = vst.msk [vmem:[#allocation8] sm:$0x3] %vm172_vm4, %v183_v39 }
 0x2c1   :  { %307 = shalt.err (!%p304_p5)
}
 0x2c2   :  { %194 = dma.vmem_to_hbm [thread:$0]  %s192_s10, 32, %s389_s5, [#allocation4]  }
 0x2c3   :  { %320 = dma.done.wait [#allocation4], 32  }
 0x2c4   :  { %321 = vsyncadd [#allocation4], 4294967264 }
 0x2c5   :  { %198 = vsyncpa [#allocation3], 1 }
 0x2c6   :  { %199 = vsyncpa [#allocation6], 1 }
 0x2c7   :  { %200 = vsyncpa [#allocation4], 1 }

</bundles_post_ra>
